<compile_context>
chip_gen: v7x
topology: tpu7x:2x2x1
jax: 0.10.0
libtpu: 0.0.40
codegen_flags: <defaults>
</compile_context>

<pallas_src>
import functools

import jax
import jax.numpy as jnp
from jax import lax
from jax.experimental import pallas as pl
from jax.experimental.pallas import tpu as pltpu

_LANES = 128
_CHUNK = 8  # sublane rows per inner chunk: one f32 vreg per channel


def _partials_kernel(x_ref, t_ref, out_ref, *, n_chunks):
    """Accumulate per-batch tp / sum(p) / sum(y) soft-dice partials."""
    C = x_ref.shape[1]
    s = pl.program_id(1)

    @pl.when(s == 0)
    def _init():
        out_ref[...] = jnp.zeros_like(out_ref)

    def chunk(off, carry):
        tp, sp, sy = carry
        # Re-read the (already VMEM-resident) input block per chunk; cast per
        # chunk so bf16 inputs stream from HBM as bf16.
        xs = [x_ref[0, c, pl.ds(off, _CHUNK), :].astype(jnp.float32)
              for c in range(C)]
        m = xs[0]
        for c in range(1, C):
            m = jnp.maximum(m, xs[c])
        es = [jnp.exp(xc - m) for xc in xs]          # one exp per channel
        denom = es[0]
        for c in range(1, C):
            denom = denom + es[c]
        inv = pl.reciprocal(denom, approx=True)      # EUP slot, ~free
        t = t_ref[0, 0, pl.ds(off, _CHUNK), :]
        tp_n, sp_n, sy_n = [], [], []
        for c in range(C):
            p_c = es[c] * inv
            y_c = (t == c).astype(jnp.float32)
            tp_n.append(tp[c] + p_c * y_c)
            sp_n.append(sp[c] + p_c)
            sy_n.append(sy[c] + y_c)
        return tuple(tp_n), tuple(sp_n), tuple(sy_n)

    zeros = tuple(jnp.zeros((_CHUNK, _LANES), jnp.float32) for _ in range(C))
    init = (zeros, zeros, zeros)

    if n_chunks <= 8:
        # Short fixed trip count: unroll in Python for LLO visibility.
        carry = init
        for i in range(n_chunks):
            carry = chunk(i * _CHUNK, carry)
    else:
        carry = lax.fori_loop(
            0, n_chunks,
            lambda i, c: chunk(pl.multiple_of(i * _CHUNK, _CHUNK), c),
            init)

    tp, sp, sy = carry
    # Only 3*C small (8,128) read-modify-writes per grid step.
    for c in range(C):
        out_ref[0, 0, c] += tp[c]
        out_ref[0, 1, c] += sp[c]
        out_ref[0, 2, c] += sy[c]


def _pick_spatial_tiling(hw, cap):
    """Return (s_tile, s_total) in sublane rows; s_tile % 8 == 0 always."""
    s_raw = -(-hw // _LANES)
    s_raw8 = -(-s_raw // _CHUNK) * _CHUNK
    if s_raw8 <= cap:
        return s_raw8, s_raw8
    if s_raw % _CHUNK == 0:
        # Largest multiple-of-8 divisor of s_raw that fits the cap: avoids the
        # wrapper-side pad copy (extra HBM traffic) entirely.
        d = (cap // _CHUNK) * _CHUNK
        while d >= _CHUNK:
            if s_raw % d == 0:
                return d, s_raw
            d -= _CHUNK
    return cap, -(-s_raw // cap) * cap


def dc_and_wasserstein_loss(net_output, target, *, weight_dice=1.0,
                            weight_topo=1.0, smooth=1e-5,
                            max_sublane_tile=512):
    """net_output: (B, C, H, W) float; target: (B, 1, H, W) or (B, H, W) int."""
    B, C, H, W = net_output.shape
    if target.ndim == net_output.ndim:
        assert target.shape[1] == 1
        target = target[:, 0]
    assert max_sublane_tile % _CHUNK == 0 and max_sublane_tile >= _CHUNK
    HW = H * W

    s_tile, s_total = _pick_spatial_tiling(HW, max_sublane_tile)
    assert s_tile % _CHUNK == 0
    hw_pad = s_total * _LANES
    num_s_tiles = s_total // s_tile

    x = net_output.reshape(B, C, HW)
    if not jnp.issubdtype(x.dtype, jnp.floating):
        x = x.astype(jnp.float32)
    t = target.reshape(B, 1, HW).astype(jnp.int32)
    if hw_pad != HW:
        # NOTE: logits are ZERO-padded and the target is padded with -1; the
        # analytic tail correction below relies on exactly this.
        x = jnp.pad(x, ((0, 0), (0, 0), (0, hw_pad - HW)))
        t = jnp.pad(t, ((0, 0), (0, 0), (0, hw_pad - HW)), constant_values=-1)
    x = x.reshape(B, C, s_total, _LANES)
    t = t.reshape(B, 1, s_total, _LANES)

    kernel = functools.partial(_partials_kernel, n_chunks=s_tile // _CHUNK)

    partials = pl.pallas_call(
        kernel,
        out_shape=jax.ShapeDtypeStruct((B, 3, C, _CHUNK, _LANES), jnp.float32),
        grid_spec=pltpu.PrefetchScalarGridSpec(
            num_scalar_prefetch=0,
            grid=(B, num_s_tiles),
            in_specs=[
                pl.BlockSpec((1, C, s_tile, _LANES), lambda b, s: (b, 0, s, 0)),
                pl.BlockSpec((1, 1, s_tile, _LANES), lambda b, s: (b, 0, s, 0)),
            ],
            out_specs=pl.BlockSpec((1, 3, C, _CHUNK, _LANES),
                                   lambda b, s: (b, 0, 0, 0, 0)),
        ),
        compiler_params=pltpu.CompilerParams(
            dimension_semantics=("parallel", "arbitrary")),
    )(x, t)

    # Tiny finalize in plain JAX: cross-batch/lane reduction + dice + weights.
    sums = jnp.sum(partials, axis=(0, 3, 4))      # (3, C)
    tp, sp, sy = sums[0], sums[1], sums[2]
    pad_px = hw_pad - HW
    if pad_px:
        # Zero-padded logits -> uniform softmax (p_c = 1/C); -1 target -> zero
        # one-hot. Only sum(p) is overcounted: subtract pad pixels / C.
        sp = sp - (B * pad_px) / C
    fp = sp - tp
    fn = sy - tp
    dc = (2.0 * tp + smooth) / (2.0 * tp + fp + fn + smooth + 1e-8)
    if C > 1:
        dc_loss = -jnp.mean(dc[1:])               # do_bg=False
    else:
        dc_loss = jnp.float32(0.0)
    topo_loss = 0.0  # TODO(synk): HutopoLoss not translatable to Pallas
    return weight_dice * dc_loss + weight_topo * topo_loss


def _reference(net_output, target, *, weight_dice=1.0, weight_topo=1.0,
               smooth=1e-5):
    """Pure-JAX reference of the same forward (topo term = 0)."""
    B, C, H, W = net_output.shape
    if target.ndim == net_output.ndim:
        target = target[:, 0]
    p = jax.nn.softmax(net_output.astype(jnp.float32), axis=1)
    y = jax.nn.one_hot(target, C, dtype=jnp.float32).transpose(0, 3, 1, 2)
    axes = (0, 2, 3)   # batch_dice=True
    tp = jnp.sum(p * y, axis=axes)
    fp = jnp.sum(p * (1 - y), axis=axes)
    fn = jnp.sum((1 - p) * y, axis=axes)
    dc = (2 * tp + smooth) / (2 * tp + fp + fn + smooth + 1e-8)
    dc_loss = -jnp.mean(dc[1:])   # do_bg=False
    return weight_dice * dc_loss + weight_topo * 0.0


if __name__ == "__main__":
    key = jax.random.PRNGKey(0)

    def _check(B, C, H, W, **kw):
        k = jax.random.fold_in(key, B * 100000 + C * 10000 + H * 100 + W)
        k1, k2 = jax.random.split(k)
        net_output = jax.random.normal(k1, (B, C, H, W), dtype=jnp.float32)
        target = jax.random.randint(k2, (B, 1, H, W), 0, C, dtype=jnp.int32)
        loss = dc_and_wasserstein_loss(net_output, target,
                                       weight_dice=1.0, weight_topo=1.0, **kw)
        loss = jax.block_until_ready(loss)
        ref = _reference(net_output, target, weight_dice=1.0, weight_topo=1.0)
        assert jnp.allclose(loss, ref, atol=1e-3, rtol=1e-3), \
            (B, C, H, W, loss, ref)

    # Base case: single spatial tile with sublane padding + analytic correction.
    _check(2, 4, 16, 16)
    # Multiple spatial tiles + per-batch accumulation (small tile forces tiling),
    # no padding (s_tile divides ceil(HW/128)).
    _check(2, 5, 64, 64, max_sublane_tile=8)
    # Tiling and padding together (fallback tiling path).
    _check(1, 3, 40, 40, max_sublane_tile=8)
    # Larger tile -> inner lax.fori_loop chunked path, no padding.
    _check(1, 4, 96, 96)

    print("KERNEL_OK")
</pallas_src>

<mosaic_0001>
module attributes {stable_mosaic.version = 11 : i64} {
  func.func @_partials_kernel(%arg0: i32, %arg1: i32, %arg2: memref<1x4x8x128xf32, #tpu.memory_space<vmem>>, %arg3: memref<1x1x8x128xi32, #tpu.memory_space<vmem>>, %arg4: memref<1x3x4x8x128xf32, #tpu.memory_space<vmem>>) attributes {dimension_semantics = [#tpu.dimension_semantics<parallel>, #tpu.dimension_semantics<arbitrary>], iteration_bounds = array<i64: 2, 1>, scalar_prefetch = 0 : i64, scratch_operands = 0 : i64, tpu.core_type = #tpu.core_type<tc>, window_params = [{transform_indices = @transform_0, window_bounds = array<i64: 1, 4, 8, 128>}, {transform_indices = @transform_1, window_bounds = array<i64: 1, 1, 8, 128>}, {transform_indices = @transform_2, window_bounds = array<i64: 1, 3, 4, 8, 128>}]} {
    %c0_i32 = arith.constant 0 : i32
    %0 = arith.cmpi eq, %arg1, %c0_i32 : i32
    %1 = arith.extui %0 : i1 to i32
    %c0_i32_0 = arith.constant 0 : i32
    %2 = arith.cmpi ne, %1, %c0_i32_0 : i32
    scf.if %2 {
      %cst_141 = arith.constant 0.000000e+00 : f32
      %140 = vector.broadcast %cst_141 : f32 to vector<1x3x4x8x128xf32>
      %c0_142 = arith.constant 0 : index
      %c0_143 = arith.constant 0 : index
      %c0_144 = arith.constant 0 : index
      %c0_145 = arith.constant 0 : index
      %c0_146 = arith.constant 0 : index
      %141 = vector.load %arg4[%c0_142, %c0_143, %c0_144, %c0_145, %c0_146] : memref<1x3x4x8x128xf32, #tpu.memory_space<vmem>>, vector<1x3x4x8x128xf32>
      tpu.vector_store %arg4[%c0_142, %c0_143, %c0_144, %c0_145, %c0_146], %140 {strides = array<i32>} : memref<1x3x4x8x128xf32, #tpu.memory_space<vmem>>, vector<1x3x4x8x128xf32>,
    } else {
    }
    %cst = arith.constant 0.000000e+00 : f32
    %3 = vector.broadcast %cst : f32 to vector<8x128xf32>
    %cst_1 = arith.constant 0.000000e+00 : f32
    %4 = vector.broadcast %cst_1 : f32 to vector<8x128xf32>
    %cst_2 = arith.constant 0.000000e+00 : f32
    %5 = vector.broadcast %cst_2 : f32 to vector<8x128xf32>
    %cst_3 = arith.constant 0.000000e+00 : f32
    %6 = vector.broadcast %cst_3 : f32 to vector<8x128xf32>
    %c0 = arith.constant 0 : index
    %c0_4 = arith.constant 0 : index
    %c0_5 = arith.constant 0 : index
    %c0_6 = arith.constant 0 : index
    %7 = vector.load %arg2[%c0, %c0_4, %c0_5, %c0_6] : memref<1x4x8x128xf32, #tpu.memory_space<vmem>>, vector<1x1x8x128xf32>
    %8 = vector.shape_cast %7 : vector<1x1x8x128xf32> to vector<8x128xf32>
    %c0_7 = arith.constant 0 : index
    %c1 = arith.constant 1 : index
    %c0_8 = arith.constant 0 : index
    %c0_9 = arith.constant 0 : index
    %9 = vector.load %arg2[%c0_7, %c1, %c0_8, %c0_9] : memref<1x4x8x128xf32, #tpu.memory_space<vmem>>, vector<1x1x8x128xf32>
    %10 = vector.shape_cast %9 : vector<1x1x8x128xf32> to vector<8x128xf32>
    %c0_10 = arith.constant 0 : index
    %c2 = arith.constant 2 : index
    %c0_11 = arith.constant 0 : index
    %c0_12 = arith.constant 0 : index
    %11 = vector.load %arg2[%c0_10, %c2, %c0_11, %c0_12] : memref<1x4x8x128xf32, #tpu.memory_space<vmem>>, vector<1x1x8x128xf32>
    %12 = vector.shape_cast %11 : vector<1x1x8x128xf32> to vector<8x128xf32>
    %c0_13 = arith.constant 0 : index
    %c3 = arith.constant 3 : index
    %c0_14 = arith.constant 0 : index
    %c0_15 = arith.constant 0 : index
    %13 = vector.load %arg2[%c0_13, %c3, %c0_14, %c0_15] : memref<1x4x8x128xf32, #tpu.memory_space<vmem>>, vector<1x1x8x128xf32>
    %14 = vector.shape_cast %13 : vector<1x1x8x128xf32> to vector<8x128xf32>
    %15 = arith.maximumf %8, %10 : vector<8x128xf32>
    %16 = arith.maximumf %15, %12 : vector<8x128xf32>
    %17 = arith.maximumf %16, %14 : vector<8x128xf32>
    %18 = arith.subf %8, %17 : vector<8x128xf32>
    %19 = math.exp %18 : vector<8x128xf32>
    %20 = arith.subf %10, %17 : vector<8x128xf32>
    %21 = math.exp %20 : vector<8x128xf32>
    %22 = arith.subf %12, %17 : vector<8x128xf32>
    %23 = math.exp %22 : vector<8x128xf32>
    %24 = arith.subf %14, %17 : vector<8x128xf32>
    %25 = math.exp %24 : vector<8x128xf32>
    %26 = arith.addf %19, %21 : vector<8x128xf32>
    %27 = arith.addf %26, %23 : vector<8x128xf32>
    %28 = arith.addf %27, %25 : vector<8x128xf32>
    %29 = tpu.reciprocal %28 {approx = true} : vector<8x128xf32> -> vector<8x128xf32>
    %c0_16 = arith.constant 0 : index
    %c0_17 = arith.constant 0 : index
    %c0_18 = arith.constant 0 : index
    %c0_19 = arith.constant 0 : index
    %30 = vector.load %arg3[%c0_16, %c0_17, %c0_18, %c0_19] : memref<1x1x8x128xi32, #tpu.memory_space<vmem>>, vector<1x1x8x128xi32>
    %31 = vector.shape_cast %30 : vector<1x1x8x128xi32> to vector<8x128xi32>
    %32 = arith.mulf %19, %29 : vector<8x128xf32>
    %c0_i32_20 = arith.constant 0 : i32
    %33 = vector.broadcast %c0_i32_20 : i32 to vector<8x128xi32>
    %34 = arith.cmpi eq, %31, %33 : vector<8x128xi32>
    %35 = arith.extui %34 : vector<8x128xi1> to vector<8x128xi32>
    %36 = arith.sitofp %35 : vector<8x128xi32> to vector<8x128xf32>
    %37 = arith.mulf %32, %36 : vector<8x128xf32>
    %38 = arith.addf %3, %37 : vector<8x128xf32>
    %39 = arith.addf %3, %32 : vector<8x128xf32>
    %40 = arith.addf %3, %36 : vector<8x128xf32>
    %41 = arith.mulf %21, %29 : vector<8x128xf32>
    %c1_i32 = arith.constant 1 : i32
    %42 = vector.broadcast %c1_i32 : i32 to vector<8x128xi32>
    %43 = arith.cmpi eq, %31, %42 : vector<8x128xi32>
    %44 = arith.extui %43 : vector<8x128xi1> to vector<8x128xi32>
    %45 = arith.sitofp %44 : vector<8x128xi32> to vector<8x128xf32>
    %46 = arith.mulf %41, %45 : vector<8x128xf32>
    %47 = arith.addf %4, %46 : vector<8x128xf32>
    %48 = arith.addf %4, %41 : vector<8x128xf32>
    %49 = arith.addf %4, %45 : vector<8x128xf32>
    %50 = arith.mulf %23, %29 : vector<8x128xf32>
    %c2_i32 = arith.constant 2 : i32
    %51 = vector.broadcast %c2_i32 : i32 to vector<8x128xi32>
    %52 = arith.cmpi eq, %31, %51 : vector<8x128xi32>
    %53 = arith.extui %52 : vector<8x128xi1> to vector<8x128xi32>
    %54 = arith.sitofp %53 : vector<8x128xi32> to vector<8x128xf32>
    %55 = arith.mulf %50, %54 : vector<8x128xf32>
    %56 = arith.addf %5, %55 : vector<8x128xf32>
    %57 = arith.addf %5, %50 : vector<8x128xf32>
    %58 = arith.addf %5, %54 : vector<8x128xf32>
    %59 = arith.mulf %25, %29 : vector<8x128xf32>
    %c3_i32 = arith.constant 3 : i32
    %60 = vector.broadcast %c3_i32 : i32 to vector<8x128xi32>
    %61 = arith.cmpi eq, %31, %60 : vector<8x128xi32>
    %62 = arith.extui %61 : vector<8x128xi1> to vector<8x128xi32>
    %63 = arith.sitofp %62 : vector<8x128xi32> to vector<8x128xf32>
    %64 = arith.mulf %59, %63 : vector<8x128xf32>
    %65 = arith.addf %6, %64 : vector<8x128xf32>
    %66 = arith.addf %6, %59 : vector<8x128xf32>
    %67 = arith.addf %6, %63 : vector<8x128xf32>
    %c0_21 = arith.constant 0 : index
    %c0_22 = arith.constant 0 : index
    %c0_23 = arith.constant 0 : index
    %c0_24 = arith.constant 0 : index
    %c0_25 = arith.constant 0 : index
    %68 = vector.load %arg4[%c0_21, %c0_22, %c0_23, %c0_24, %c0_25] : memref<1x3x4x8x128xf32, #tpu.memory_space<vmem>>, vector<1x1x1x8x128xf32>
    %69 = vector.shape_cast %68 : vector<1x1x1x8x128xf32> to vector<8x128xf32>
    %70 = arith.addf %69, %38 : vector<8x128xf32>
    %c0_26 = arith.constant 0 : index
    %c0_27 = arith.constant 0 : index
    %c0_28 = arith.constant 0 : index
    %c0_29 = arith.constant 0 : index
    %c0_30 = arith.constant 0 : index
    %71 = vector.load %arg4[%c0_26, %c0_27, %c0_28, %c0_29, %c0_30] : memref<1x3x4x8x128xf32, #tpu.memory_space<vmem>>, vector<1x1x1x8x128xf32>
    %72 = vector.shape_cast %71 : vector<1x1x1x8x128xf32> to vector<8x128xf32>
    %73 = vector.shape_cast %70 : vector<8x128xf32> to vector<1x1x1x8x128xf32>
    tpu.vector_store %arg4[%c0_26, %c0_27, %c0_28, %c0_29, %c0_30], %73 {strides = array<i32>} : memref<1x3x4x8x128xf32, #tpu.memory_space<vmem>>, vector<1x1x1x8x128xf32>,
    %c0_31 = arith.constant 0 : index
    %c1_32 = arith.constant 1 : index
    %c0_33 = arith.constant 0 : index
    %c0_34 = arith.constant 0 : index
    %c0_35 = arith.constant 0 : index
    %74 = vector.load %arg4[%c0_31, %c1_32, %c0_33, %c0_34, %c0_35] : memref<1x3x4x8x128xf32, #tpu.memory_space<vmem>>, vector<1x1x1x8x128xf32>
    %75 = vector.shape_cast %74 : vector<1x1x1x8x128xf32> to vector<8x128xf32>
    %76 = arith.addf %75, %39 : vector<8x128xf32>
    %c0_36 = arith.constant 0 : index
    %c1_37 = arith.constant 1 : index
    %c0_38 = arith.constant 0 : index
    %c0_39 = arith.constant 0 : index
    %c0_40 = arith.constant 0 : index
    %77 = vector.load %arg4[%c0_36, %c1_37, %c0_38, %c0_39, %c0_40] : memref<1x3x4x8x128xf32, #tpu.memory_space<vmem>>, vector<1x1x1x8x128xf32>
    %78 = vector.shape_cast %77 : vector<1x1x1x8x128xf32> to vector<8x128xf32>
    %79 = vector.shape_cast %76 : vector<8x128xf32> to vector<1x1x1x8x128xf32>
    tpu.vector_store %arg4[%c0_36, %c1_37, %c0_38, %c0_39, %c0_40], %79 {strides = array<i32>} : memref<1x3x4x8x128xf32, #tpu.memory_space<vmem>>, vector<1x1x1x8x128xf32>,
    %c0_41 = arith.constant 0 : index
    %c2_42 = arith.constant 2 : index
    %c0_43 = arith.constant 0 : index
    %c0_44 = arith.constant 0 : index
    %c0_45 = arith.constant 0 : index
    %80 = vector.load %arg4[%c0_41, %c2_42, %c0_43, %c0_44, %c0_45] : memref<1x3x4x8x128xf32, #tpu.memory_space<vmem>>, vector<1x1x1x8x128xf32>
    %81 = vector.shape_cast %80 : vector<1x1x1x8x128xf32> to vector<8x128xf32>
    %82 = arith.addf %81, %40 : vector<8x128xf32>
    %c0_46 = arith.constant 0 : index
    %c2_47 = arith.constant 2 : index
    %c0_48 = arith.constant 0 : index
    %c0_49 = arith.constant 0 : index
    %c0_50 = arith.constant 0 : index
    %83 = vector.load %arg4[%c0_46, %c2_47, %c0_48, %c0_49, %c0_50] : memref<1x3x4x8x128xf32, #tpu.memory_space<vmem>>, vector<1x1x1x8x128xf32>
    %84 = vector.shape_cast %83 : vector<1x1x1x8x128xf32> to vector<8x128xf32>
    %85 = vector.shape_cast %82 : vector<8x128xf32> to vector<1x1x1x8x128xf32>
    tpu.vector_store %arg4[%c0_46, %c2_47, %c0_48, %c0_49, %c0_50], %85 {strides = array<i32>} : memref<1x3x4x8x128xf32, #tpu.memory_space<vmem>>, vector<1x1x1x8x128xf32>,
    %c0_51 = arith.constant 0 : index
    %c0_52 = arith.constant 0 : index
    %c1_53 = arith.constant 1 : index
    %c0_54 = arith.constant 0 : index
    %c0_55 = arith.constant 0 : index
    %86 = vector.load %arg4[%c0_51, %c0_52, %c1_53, %c0_54, %c0_55] : memref<1x3x4x8x128xf32, #tpu.memory_space<vmem>>, vector<1x1x1x8x128xf32>
    %87 = vector.shape_cast %86 : vector<1x1x1x8x128xf32> to vector<8x128xf32>
    %88 = arith.addf %87, %47 : vector<8x128xf32>
    %c0_56 = arith.constant 0 : index
    %c0_57 = arith.constant 0 : index
    %c1_58 = arith.constant 1 : index
    %c0_59 = arith.constant 0 : index
    %c0_60 = arith.constant 0 : index
    %89 = vector.load %arg4[%c0_56, %c0_57, %c1_58, %c0_59, %c0_60] : memref<1x3x4x8x128xf32, #tpu.memory_space<vmem>>, vector<1x1x1x8x128xf32>
    %90 = vector.shape_cast %89 : vector<1x1x1x8x128xf32> to vector<8x128xf32>
    %91 = vector.shape_cast %88 : vector<8x128xf32> to vector<1x1x1x8x128xf32>
    tpu.vector_store %arg4[%c0_56, %c0_57, %c1_58, %c0_59, %c0_60], %91 {strides = array<i32>} : memref<1x3x4x8x128xf32, #tpu.memory_space<vmem>>, vector<1x1x1x8x128xf32>,
    %c0_61 = arith.constant 0 : index
    %c1_62 = arith.constant 1 : index
    %c1_63 = arith.constant 1 : index
    %c0_64 = arith.constant 0 : index
    %c0_65 = arith.constant 0 : index
    %92 = vector.load %arg4[%c0_61, %c1_62, %c1_63, %c0_64, %c0_65] : memref<1x3x4x8x128xf32, #tpu.memory_space<vmem>>, vector<1x1x1x8x128xf32>
    %93 = vector.shape_cast %92 : vector<1x1x1x8x128xf32> to vector<8x128xf32>
    %94 = arith.addf %93, %48 : vector<8x128xf32>
    %c0_66 = arith.constant 0 : index
    %c1_67 = arith.constant 1 : index
    %c1_68 = arith.constant 1 : index
    %c0_69 = arith.constant 0 : index
    %c0_70 = arith.constant 0 : index
    %95 = vector.load %arg4[%c0_66, %c1_67, %c1_68, %c0_69, %c0_70] : memref<1x3x4x8x128xf32, #tpu.memory_space<vmem>>, vector<1x1x1x8x128xf32>
    %96 = vector.shape_cast %95 : vector<1x1x1x8x128xf32> to vector<8x128xf32>
    %97 = vector.shape_cast %94 : vector<8x128xf32> to vector<1x1x1x8x128xf32>
    tpu.vector_store %arg4[%c0_66, %c1_67, %c1_68, %c0_69, %c0_70], %97 {strides = array<i32>} : memref<1x3x4x8x128xf32, #tpu.memory_space<vmem>>, vector<1x1x1x8x128xf32>,
    %c0_71 = arith.constant 0 : index
    %c2_72 = arith.constant 2 : index
    %c1_73 = arith.constant 1 : index
    %c0_74 = arith.constant 0 : index
    %c0_75 = arith.constant 0 : index
    %98 = vector.load %arg4[%c0_71, %c2_72, %c1_73, %c0_74, %c0_75] : memref<1x3x4x8x128xf32, #tpu.memory_space<vmem>>, vector<1x1x1x8x128xf32>
    %99 = vector.shape_cast %98 : vector<1x1x1x8x128xf32> to vector<8x128xf32>
    %100 = arith.addf %99, %49 : vector<8x128xf32>
    %c0_76 = arith.constant 0 : index
    %c2_77 = arith.constant 2 : index
    %c1_78 = arith.constant 1 : index
    %c0_79 = arith.constant 0 : index
    %c0_80 = arith.constant 0 : index
    %101 = vector.load %arg4[%c0_76, %c2_77, %c1_78, %c0_79, %c0_80] : memref<1x3x4x8x128xf32, #tpu.memory_space<vmem>>, vector<1x1x1x8x128xf32>
    %102 = vector.shape_cast %101 : vector<1x1x1x8x128xf32> to vector<8x128xf32>
    %103 = vector.shape_cast %100 : vector<8x128xf32> to vector<1x1x1x8x128xf32>
    tpu.vector_store %arg4[%c0_76, %c2_77, %c1_78, %c0_79, %c0_80], %103 {strides = array<i32>} : memref<1x3x4x8x128xf32, #tpu.memory_space<vmem>>, vector<1x1x1x8x128xf32>,
    %c0_81 = arith.constant 0 : index
    %c0_82 = arith.constant 0 : index
    %c2_83 = arith.constant 2 : index
    %c0_84 = arith.constant 0 : index
    %c0_85 = arith.constant 0 : index
    %104 = vector.load %arg4[%c0_81, %c0_82, %c2_83, %c0_84, %c0_85] : memref<1x3x4x8x128xf32, #tpu.memory_space<vmem>>, vector<1x1x1x8x128xf32>
    %105 = vector.shape_cast %104 : vector<1x1x1x8x128xf32> to vector<8x128xf32>
    %106 = arith.addf %105, %56 : vector<8x128xf32>
    %c0_86 = arith.constant 0 : index
    %c0_87 = arith.constant 0 : index
    %c2_88 = arith.constant 2 : index
    %c0_89 = arith.constant 0 : index
    %c0_90 = arith.constant 0 : index
    %107 = vector.load %arg4[%c0_86, %c0_87, %c2_88, %c0_89, %c0_90] : memref<1x3x4x8x128xf32, #tpu.memory_space<vmem>>, vector<1x1x1x8x128xf32>
    %108 = vector.shape_cast %107 : vector<1x1x1x8x128xf32> to vector<8x128xf32>
    %109 = vector.shape_cast %106 : vector<8x128xf32> to vector<1x1x1x8x128xf32>
    tpu.vector_store %arg4[%c0_86, %c0_87, %c2_88, %c0_89, %c0_90], %109 {strides = array<i32>} : memref<1x3x4x8x128xf32, #tpu.memory_space<vmem>>, vector<1x1x1x8x128xf32>,
    %c0_91 = arith.constant 0 : index
    %c1_92 = arith.constant 1 : index
    %c2_93 = arith.constant 2 : index
    %c0_94 = arith.constant 0 : index
    %c0_95 = arith.constant 0 : index
    %110 = vector.load %arg4[%c0_91, %c1_92, %c2_93, %c0_94, %c0_95] : memref<1x3x4x8x128xf32, #tpu.memory_space<vmem>>, vector<1x1x1x8x128xf32>
    %111 = vector.shape_cast %110 : vector<1x1x1x8x128xf32> to vector<8x128xf32>
    %112 = arith.addf %111, %57 : vector<8x128xf32>
    %c0_96 = arith.constant 0 : index
    %c1_97 = arith.constant 1 : index
    %c2_98 = arith.constant 2 : index
    %c0_99 = arith.constant 0 : index
    %c0_100 = arith.constant 0 : index
    %113 = vector.load %arg4[%c0_96, %c1_97, %c2_98, %c0_99, %c0_100] : memref<1x3x4x8x128xf32, #tpu.memory_space<vmem>>, vector<1x1x1x8x128xf32>
    %114 = vector.shape_cast %113 : vector<1x1x1x8x128xf32> to vector<8x128xf32>
    %115 = vector.shape_cast %112 : vector<8x128xf32> to vector<1x1x1x8x128xf32>
    tpu.vector_store %arg4[%c0_96, %c1_97, %c2_98, %c0_99, %c0_100], %115 {strides = array<i32>} : memref<1x3x4x8x128xf32, #tpu.memory_space<vmem>>, vector<1x1x1x8x128xf32>,
    %c0_101 = arith.constant 0 : index
    %c2_102 = arith.constant 2 : index
    %c2_103 = arith.constant 2 : index
    %c0_104 = arith.constant 0 : index
    %c0_105 = arith.constant 0 : index
    %116 = vector.load %arg4[%c0_101, %c2_102, %c2_103, %c0_104, %c0_105] : memref<1x3x4x8x128xf32, #tpu.memory_space<vmem>>, vector<1x1x1x8x128xf32>
    %117 = vector.shape_cast %116 : vector<1x1x1x8x128xf32> to vector<8x128xf32>
    %118 = arith.addf %117, %58 : vector<8x128xf32>
    %c0_106 = arith.constant 0 : index
    %c2_107 = arith.constant 2 : index
    %c2_108 = arith.constant 2 : index
    %c0_109 = arith.constant 0 : index
    %c0_110 = arith.constant 0 : index
    %119 = vector.load %arg4[%c0_106, %c2_107, %c2_108, %c0_109, %c0_110] : memref<1x3x4x8x128xf32, #tpu.memory_space<vmem>>, vector<1x1x1x8x128xf32>
    %120 = vector.shape_cast %119 : vector<1x1x1x8x128xf32> to vector<8x128xf32>
    %121 = vector.shape_cast %118 : vector<8x128xf32> to vector<1x1x1x8x128xf32>
    tpu.vector_store %arg4[%c0_106, %c2_107, %c2_108, %c0_109, %c0_110], %121 {strides = array<i32>} : memref<1x3x4x8x128xf32, #tpu.memory_space<vmem>>, vector<1x1x1x8x128xf32>,
    %c0_111 = arith.constant 0 : index
    %c0_112 = arith.constant 0 : index
    %c3_113 = arith.constant 3 : index
    %c0_114 = arith.constant 0 : index
    %c0_115 = arith.constant 0 : index
    %122 = vector.load %arg4[%c0_111, %c0_112, %c3_113, %c0_114, %c0_115] : memref<1x3x4x8x128xf32, #tpu.memory_space<vmem>>, vector<1x1x1x8x128xf32>
    %123 = vector.shape_cast %122 : vector<1x1x1x8x128xf32> to vector<8x128xf32>
    %124 = arith.addf %123, %65 : vector<8x128xf32>
    %c0_116 = arith.constant 0 : index
    %c0_117 = arith.constant 0 : index
    %c3_118 = arith.constant 3 : index
    %c0_119 = arith.constant 0 : index
    %c0_120 = arith.constant 0 : index
    %125 = vector.load %arg4[%c0_116, %c0_117, %c3_118, %c0_119, %c0_120] : memref<1x3x4x8x128xf32, #tpu.memory_space<vmem>>, vector<1x1x1x8x128xf32>
    %126 = vector.shape_cast %125 : vector<1x1x1x8x128xf32> to vector<8x128xf32>
    %127 = vector.shape_cast %124 : vector<8x128xf32> to vector<1x1x1x8x128xf32>
    tpu.vector_store %arg4[%c0_116, %c0_117, %c3_118, %c0_119, %c0_120], %127 {strides = array<i32>} : memref<1x3x4x8x128xf32, #tpu.memory_space<vmem>>, vector<1x1x1x8x128xf32>,
    %c0_121 = arith.constant 0 : index
    %c1_122 = arith.constant 1 : index
    %c3_123 = arith.constant 3 : index
    %c0_124 = arith.constant 0 : index
    %c0_125 = arith.constant 0 : index
    %128 = vector.load %arg4[%c0_121, %c1_122, %c3_123, %c0_124, %c0_125] : memref<1x3x4x8x128xf32, #tpu.memory_space<vmem>>, vector<1x1x1x8x128xf32>
    %129 = vector.shape_cast %128 : vector<1x1x1x8x128xf32> to vector<8x128xf32>
    %130 = arith.addf %129, %66 : vector<8x128xf32>
    %c0_126 = arith.constant 0 : index
    %c1_127 = arith.constant 1 : index
    %c3_128 = arith.constant 3 : index
    %c0_129 = arith.constant 0 : index
    %c0_130 = arith.constant 0 : index
    %131 = vector.load %arg4[%c0_126, %c1_127, %c3_128, %c0_129, %c0_130] : memref<1x3x4x8x128xf32, #tpu.memory_space<vmem>>, vector<1x1x1x8x128xf32>
    %132 = vector.shape_cast %131 : vector<1x1x1x8x128xf32> to vector<8x128xf32>
    %133 = vector.shape_cast %130 : vector<8x128xf32> to vector<1x1x1x8x128xf32>
    tpu.vector_store %arg4[%c0_126, %c1_127, %c3_128, %c0_129, %c0_130], %133 {strides = array<i32>} : memref<1x3x4x8x128xf32, #tpu.memory_space<vmem>>, vector<1x1x1x8x128xf32>,
    %c0_131 = arith.constant 0 : index
    %c2_132 = arith.constant 2 : index
    %c3_133 = arith.constant 3 : index
    %c0_134 = arith.constant 0 : index
    %c0_135 = arith.constant 0 : index
    %134 = vector.load %arg4[%c0_131, %c2_132, %c3_133, %c0_134, %c0_135] : memref<1x3x4x8x128xf32, #tpu.memory_space<vmem>>, vector<1x1x1x8x128xf32>
    %135 = vector.shape_cast %134 : vector<1x1x1x8x128xf32> to vector<8x128xf32>
    %136 = arith.addf %135, %67 : vector<8x128xf32>
    %c0_136 = arith.constant 0 : index
    %c2_137 = arith.constant 2 : index
    %c3_138 = arith.constant 3 : index
    %c0_139 = arith.constant 0 : index
    %c0_140 = arith.constant 0 : index
    %137 = vector.load %arg4[%c0_136, %c2_137, %c3_138, %c0_139, %c0_140] : memref<1x3x4x8x128xf32, #tpu.memory_space<vmem>>, vector<1x1x1x8x128xf32>
    %138 = vector.shape_cast %137 : vector<1x1x1x8x128xf32> to vector<8x128xf32>
    %139 = vector.shape_cast %136 : vector<8x128xf32> to vector<1x1x1x8x128xf32>
    tpu.vector_store %arg4[%c0_136, %c2_137, %c3_138, %c0_139, %c0_140], %139 {strides = array<i32>} : memref<1x3x4x8x128xf32, #tpu.memory_space<vmem>>, vector<1x1x1x8x128xf32>,
    return
  }
  func.func @transform_0(%arg0: i32, %arg1: i32) -> (i32, i32, i32, i32) {
    %c0_i32 = arith.constant 0 : i32
    %c0_i32_0 = arith.constant 0 : i32
    %c0_i32_1 = arith.constant 0 : i32
    return %arg0, %c0_i32, %arg1, %c0_i32_0 : i32, i32, i32, i32
  }
  func.func @transform_1(%arg0: i32, %arg1: i32) -> (i32, i32, i32, i32) {
    %c0_i32 = arith.constant 0 : i32
    %c0_i32_0 = arith.constant 0 : i32
    %c0_i32_1 = arith.constant 0 : i32
    return %arg0, %c0_i32, %arg1, %c0_i32_0 : i32, i32, i32, i32
  }
  func.func @transform_2(%arg0: i32, %arg1: i32) -> (i32, i32, i32, i32, i32) {
    %c0_i32 = arith.constant 0 : i32
    %c0_i32_0 = arith.constant 0 : i32
    %c0_i32_1 = arith.constant 0 : i32
    %c0_i32_2 = arith.constant 0 : i32
    %c0_i32_3 = arith.constant 0 : i32
    return %arg0, %c0_i32, %c0_i32_0, %c0_i32_1, %c0_i32_2 : i32, i32, i32, i32, i32
  }
}

</mosaic_0001>

<bundles_post_ra>
// kernel: tpu_custom_call.1
= control target key start
LH: loop header
LB: loop body
LE: loop exit
PB: predicated region body
PF: predicated region fallthrough
CT: control target
= control target key end

     0   :  { %7 = vsyncpa [#allocation3], 0  ;;  %s993_s0 = inlined_call_operand.hbm [shape: f32[2,4,8,128], index: 0, kind: input, shape index: {}]   ;;  %s994_s1 = inlined_call_operand.hbm [shape: s32[2,1,8,128], index: 1, kind: input, shape index: {}]   ;;  %s995_s2 = inlined_call_operand.hbm [shape: f32[2,3,4,8,128], index: 2, kind: output, shape index: {}]  }
   0x1   :  { %9 = vsyncpa [#allocation3 + $0x1], 0 }
   0x2   :  { %10 = vsyncpa [#allocation6], 0 }
   0x3   :  { %12 = vsyncpa [#allocation6 + $0x1], 0 }
   0x4   :  { %13 = vsyncpa [#allocation4], 0 }
   0x5   :  { %15 = vsyncpa [#allocation4 + $0x1], 0  ;;  %s760_s9 = smov 0   ;;  %s762_s10 = smov 0  }
   0x6   :  { %s764_s11 = smov 0   ;;  %s766_s12 = smov 0  }
   0x7   :  { %s768_s13 = smov 0   ;;  %s770_s14 = smov 0  }
   0x8 LB: > { %s460_s15 = sadd.s32 4294967295, %s735_s14   ;;  %s461_s16 = sadd.s32 4294967294, %s735_s14   ;;  %s735_s14 = sphi %s770_s14, %s21_s14   ;;  %s731_s13 = sphi %s768_s13, %s1014_s13   ;;  %s727_s12 = sphi %s766_s12, %s1013_s12   ;;  %s723_s11 = sphi %s764_s11, %s1012_s11   ;;  %s719_s10 = sphi %s762_s10, %s1011_s10   ;;  %s715_s9 = sphi %s760_s9, %s1010_s9  }
   0x9   : > { %s33_s17 = sadd.s32 1, %s731_s13  ;;  %s42_s18 = sadd.s32 1, %s723_s11 }
   0xa   : > { %p35_p0 = scmp.ge.s32.totalorder %s33_s17, 2  ;;  %p49_p1 = scmp.ne.s32.totalorder %s723_s11, %s719_s10 }
   0xb   : > { %p50_p2 = scmp.eq.s32.totalorder %s735_s14, 0  ;;  %p55_p3 = scmp.ne.s32.totalorder %s719_s10, %s715_s9 }
   0xc   : > { %s1016_s17 = smov (%p35_p0, %s33_s17), 0  ;;  %p56_p5 = scmp.eq.s32.totalorder %s460_s15, 0 }
   0xd   : > { %p801_p4 = por %p50_p2, %p49_p1  ;;  %s37_s20 = ssub.s32 %s731_s13, %s1016_s17 }
   0xe   : > { %p107_p6 = scmp.eq.s32.totalorder %s460_s15, 1  ;;  %p40_p7 = scmp.eq.s32.totalorder %s37_s20, 0 }
   0xf   : > { %p807_p8 = por %p56_p5, %p55_p3  ;;  %p113_p10 = scmp.eq.s32.totalorder %s461_s16, 1 }
  0x10   : > { %p811_p9 = por %p107_p6, %p49_p1  ;;  %p524_p13 = scmp.lt.s32.totalorder %s735_s14, 2 }
  0x11   : > { %s999_s21 = scalar_select %p807_p8, 1, 0 }
  0x12   : > { %s1000_s22 = scalar_select %p811_p9, 1, 0 }
  0x13   : > { %s816_s23 = scalar_select %p40_p7, %s723_s11, %s42_s18  }
  0x14   : > { %p818_p11 = por %p113_p10, %p55_p3  ;;  %s825_s25 = sand.u32 1, %s723_s11  }
  0x15   : > { %s464_s26 = sshll.u32 %s825_s25, 5  ;;  %s504_s27 = sshll.u32 %s731_s13, 9 }
  0x16   : > { %s1001_s24 = scalar_select %p818_p11, 1, 0 }
  0x17   : > { %s832_s30 = scalar_lea.hbm %s993_s0, %s504_s27  ;;  %s137_s3 = scalar_lea.vmem [#allocation2], %s464_s26 }
  0x18   : > { %s145_s4 = sshll.u32 %s137_s3, 4  ;;  %p838_p0 = pnand %p524_p13, %p801_p4  ;;  %s834_s4 = int_to_ptr.vmem [resolvable:$true] %s145_s4 }
  0x19   : > { %s134_s6 = scalar_lea.sflag [#allocation3], %s825_s25  ;;  %s589_s7 = scalar_lea.hbm %s832_s30, 512 }
  0x1a   : > { %p590_p2 = scmp.ne.s32.totalorder %s832_s30, %s589_s7  ;;  %p591_p3 = pneg %p838_p0 }
  0x1b   : > { %s594_s16 = scalar_lea.hbm %s993_s0, 1024  ;;  %p595_p4 = scmp.lt.u32.totalorder %s832_s30, %s993_s0 }
  0x1c   : > { %p592_p5 = pnand %p591_p3, %p590_p2  ;;  %p596_p7 = scmp.lt.u32.totalorder %s594_s16, %s589_s7 }
  0x1d   : > { %p598_p13 = scmp.lt.u32.totalorder %s589_s7, %s832_s30 }
  0x1e   : > { %p593_p6 = pneg %p592_p5  ;;  %p597_p10 = por %p596_p7, %p595_p4 }
  0x20   : > { %p599_p12 = por %p598_p13, %p597_p10 }
  0x22   : > { %p600_p1 = pnand %p599_p12, %p593_p6 }
  0x24   : > { %603 = shalt.err (!%p600_p1)
}
  0x25   : > { %s604_s20 = scalar_lea.vmem %s834_s4, 512  ;;  %s737_s26 = smov [#allocation2]  }
  0x26   : > { %p605_p2 = scmp.ne.s32.totalorder %s834_s4, %s604_s20  ;;  %s609_s27 = sshll.u32 %s737_s26, 4  ;;  %s610_s27 = int_to_ptr.vmem [resolvable:$false] %s609_s27 }
  0x27   : > { %s611_s28 = scalar_lea.vmem %s610_s27, 1024  ;;  %p612_p9 = scmp.lt.s32.totalorder %s834_s4, %s610_s27 }
  0x28   : > { %p607_p5 = pnand %p605_p2, %p591_p3  ;;  %p613_p4 = scmp.lt.s32.totalorder %s611_s28, %s604_s20 }
  0x2a   : > { %p608_p11 = pneg %p607_p5  ;;  %p614_p7 = por %p613_p4, %p612_p9 }
  0x2c   : > { %p615_p10 = pnand %p614_p7, %p608_p11 }
  0x2e   : > { %618 = shalt.err (!%p615_p10)
}
  0x2f   : > { %s738_s29 = smov 128   ;;  %s739_s3 = smov 8  }
  0x30   : > { %516 = dma.hbm_to_vmem [thread:$0]  (!%p838_p0), %s832_s30, 512, %s834_s4, %s134_s6, %s738_s29, %s738_s29, %s739_s3  }
  0x31   : > { %p172_p12 = scmp.lt.s32.totalorder %s735_s14, 3  ;;  %s467_s7 = sshll.u32 %s825_s25, 3 }
  0x32   : > { %s468_s8 = sshll.u32 %s731_s13, 7  ;;  %p1003_p9 = scmp.ge.s32.totalorder %s735_s14, 1 }
  0x33   : > { %s883_s19 = scalar_lea.hbm %s994_s1, %s468_s8  ;;  %s159_s20 = scalar_lea.vmem [#allocation5], %s467_s7 }
  0x34   : > { %p876_p11 = pnand %p1003_p9, %p172_p12  ;;  %s167_s26 = sshll.u32 %s159_s20, 4  ;;  %s168_s26 = int_to_ptr.vmem [resolvable:$true] %s167_s26 }
  0x35   : > { %s156_s30 = scalar_lea.sflag [#allocation6], %s825_s25  ;;  %s619_s4 = scalar_lea.hbm %s883_s19, 128 }
  0x36   : > { %s1004_s15 = scalar_select %p876_p11, 1, 0 }
  0x37   : > { %p620_p1 = scmp.ne.s32.totalorder %s883_s19, %s619_s4  ;;  %s624_s28 = scalar_lea.hbm %s994_s1, 256 }
  0x38   : > { %p625_p2 = scmp.lt.u32.totalorder %s883_s19, %s994_s1  ;;  %p626_p5 = scmp.lt.u32.totalorder %s624_s28, %s619_s4 }
  0x39   : > { %p622_p6 = pnand %p620_p1, %p591_p3  ;;  %p628_p7 = scmp.lt.u32.totalorder %s619_s4, %s883_s19 }
  0x3a   : > { %p627_p4 = por %p626_p5, %p625_p2 }
  0x3b   : > { %p623_p13 = pneg %p622_p6 }
  0x3c   : > { %p629_p10 = por %p628_p7, %p627_p4 }
  0x3e   : > { %p630_p12 = pnand %p629_p10, %p623_p13 }
  0x40   : > { %633 = shalt.err (!%p630_p12)
}
  0x41   : > { %s634_s25 = scalar_lea.vmem %s168_s26, 128  ;;  %s740_s7 = smov [#allocation5]  }
  0x42   : > { %p635_p9 = scmp.ne.s32.totalorder %s168_s26, %s634_s25  ;;  %s639_s8 = sshll.u32 %s740_s7, 4  ;;  %s640_s8 = int_to_ptr.vmem [resolvable:$false] %s639_s8 }
  0x43   : > { %s641_s16 = scalar_lea.vmem %s640_s8, 256  ;;  %p642_p8 = scmp.lt.s32.totalorder %s168_s26, %s640_s8 }
  0x44   : > { %p637_p1 = pnand %p635_p9, %p591_p3  ;;  %p643_p11 = scmp.lt.s32.totalorder %s641_s16, %s634_s25 }
  0x46   : > { %p638_p6 = pneg %p637_p1  ;;  %p644_p2 = por %p643_p11, %p642_p8 }
  0x48   : > { %p645_p5 = pnand %p644_p2, %p638_p6 }
  0x4a   : > { %648 = shalt.err (!%p645_p5)
}
  0x4b   : > { %519 = dma.hbm_to_vmem [thread:$0]  (!%p838_p0), %s883_s19, 128, %s168_s26, %s156_s30  }
  0x4c   : > { %p1005_p13 = scmp.ne.s32.totalorder %s1004_s15, 0 }
  0x4d   : > { %s908_s18 = sand.u32 (!%p1005_p13), 1, %s719_s10   ;;  %p1006_p3 = scmp.ne.s32.totalorder (!%p1005_p13), %s999_s21, 0 }
  0x4e   : > { %176 = sbr.rel (%p1005_p13) target bundleno = 150 (0x96), region = 28  ;;  %s470_s20 = sshll.u32 (!%p1005_p13), %s908_s18, 5 }
  0x4f   : > { %s179_s4 = scalar_lea.sflag (!%p1005_p13), [#allocation3], %s908_s18  ;;  %s182_s6 = scalar_lea.vmem (!%p1005_p13), [#allocation2], %s470_s20 }
  0x55   : > { %702 = dma.done.wait (%p1006_p3), %s179_s4, 512  }
  0x56   : > { %704 = vsyncadd (%p1006_p3), %s179_s4, 4294966784  ;;  %s471_s5 = sshll.u32 %s908_s18, 3  ;;  %s188_s15 = scalar_lea.sflag [#allocation6], %s908_s18 }
  0x57   : > { %s191_s19 = scalar_lea.vmem [#allocation5], %s471_s5 }
  0x58   : > { %706 = dma.done.wait (%p1006_p3), %s188_s15, 128  }
  0x59   : > { %708 = vsyncadd (%p1006_p3), %s188_s15, 4294967168  ;;  %s505_s26 = smul.u32 96, %s908_s18  ;;  %v233_v0 = vld [vmem:[%s182_s6] sm:$0xff]  ;;  %v472_v1 = vld [vmem:[%s182_s6 + $0x8] sm:$0xff]  ;;  %v741_v7 = vmov 0.0   ;;  %p1007_p0 = scmp.ne.s32.totalorder %s1000_s22, 0 }
  0x5a   : > { %v473_v2 = vld [vmem:[%s182_s6 + $0x10] sm:$0xff]  ;;  %v240_v3 = vmax.f32 %v233_v0, %v472_v1  ;;  %v259_v4 = vld [vmem:[%s191_s19] sm:$0xff]  ;;  %v474_v5 = vld [vmem:[%s182_s6 + $0x18] sm:$0xff]  ;;  %s506_s30 = smul.u32 1536, %s727_s12  ;;  %s340_s12 = scalar_lea.sflag [#allocation4], %s908_s18 }
  0x5b   : > { %vm261_vm0 = vcmp.eq.s32.totalorder %v259_v4, 0  ;;  %vm269_vm1 = vcmp.eq.s32.totalorder %v259_v4, 1  ;;  %vm277_vm2 = vcmp.eq.s32.totalorder %v259_v4, 2  ;;  %vm285_vm3 = vcmp.eq.s32.totalorder %v259_v4, 3  ;;  %s923_s21 = scalar_lea.vmem [#allocation7], %s505_s26  ;;  %s742_s7 = smov [#allocation7]  }
  0x5c   : > { %v241_v6 = vmax.f32 %v240_v3, %v473_v2  ;;  %v475_v8 = vsel %vm261_vm0, 1.0, %v741_v7  ;;  %v476_v9 = vsel %vm269_vm1, 1.0, %v741_v7  ;;  %v477_v10 = vsel %vm277_vm2, 1.0, %v741_v7  ;;  %s353_s27 = sshll.u32 %s923_s21, 4  ;;  %s938_s3 = scalar_lea.hbm %s995_s2, %s506_s30  ;;  %s940_s27 = int_to_ptr.vmem [resolvable:$true] %s353_s27 }
  0x5d   : > { %v478_v11 = vsel %vm285_vm3, 1.0, %v741_v7  ;;  %482 = vst [vmem:[%s923_s21 + $0x40] sm:$0xff] %v475_v8  ;;  %488 = vst [vmem:[%s923_s21 + $0x48] sm:$0xff] %v476_v9  ;;  %s649_s25 = scalar_lea.vmem %s940_s27, 1536  ;;  %s653_s8 = sshll.u32 %s742_s7, 4  ;;  %s654_s8 = int_to_ptr.vmem [resolvable:$false] %s653_s8 }
  0x5e   : > { %v242_v12 = vmax.f32 %v241_v6, %v474_v5  ;;  %494 = vst [vmem:[%s923_s21 + $0x50] sm:$0xff] %v477_v10  ;;  %500 = vst [vmem:[%s923_s21 + $0x58] sm:$0xff] %v478_v11  ;;  %p650_p8 = scmp.ne.s32.totalorder %s940_s27, %s649_s25  ;;  %s655_s16 = scalar_lea.vmem %s654_s8, 3072 }
  0x5f   : > { %p656_p7 = scmp.lt.s32.totalorder %s940_s27, %s654_s8  ;;  %p657_p10 = scmp.lt.s32.totalorder %s655_s16, %s649_s25 }
  0x60   : > { %v243_v13 = vsub.f32 %v233_v0, %v242_v12  ;;  %v246_v14 = vsub.f32 %v472_v1, %v242_v12  ;;  %v249_v15 = vsub.f32 %v473_v2, %v242_v12  ;;  %v252_v16 = vsub.f32 %v474_v5, %v242_v12  ;;  %p651_p11 = pnand %p650_p8, %p1007_p0 }
  0x61   : > { %p658_p12 = por %p657_p10, %p656_p7 }
  0x62   : > { %v244_v17 = vmul.f32 1.442695, %v243_v13  ;;  %v247_v18 = vmul.f32 1.442695, %v246_v14  ;;  %v250_v19 = vmul.f32 1.442695, %v249_v15  ;;  %p652_p4 = pneg %p651_p11 }
  0x63   : > { %v253_v20 = vmul.f32 1.442695, %v252_v16 }
  0x64   : > { %579 = vpow2.f32 %v244_v17  ;;  %p659_p9 = pnand %p658_p12, %p652_p4 }
  0x65   : > { %581 = vpow2.f32 %v247_v18 }
  0x66   : > { %583 = vpow2.f32 %v250_v19 }
  0x67   : > { %585 = vpow2.f32 %v253_v20 }
  0x6e   : > { %v580_v21 = vpop.eup %579 }
  0x6f   : > { %v582_v22 = vpop.eup %581 }
  0x70   : > { %v584_v23 = vpop.eup %583  ;;  %v255_v24 = vadd.f32 %v582_v22, %v580_v21 }
  0x71   : > { %v586_v25 = vpop.eup %585 }
  0x72   : > { %v256_v26 = vadd.f32 %v584_v23, %v255_v24 }
  0x74   : > { %v257_v27 = vadd.f32 %v586_v25, %v256_v26 }
  0x76   : > { %587 = vrcp.f32 %v257_v27 }
  0x80   : > { %v588_v28 = vpop.eup %587 }
  0x81   : > { %v260_v29 = vmul.f32 %v588_v28, %v580_v21  ;;  %v268_v30 = vmul.f32 %v588_v28, %v582_v22  ;;  %v276_v31 = vmul.f32 %v588_v28, %v584_v23  ;;  %v284_v32 = vmul.f32 %v588_v28, %v586_v25 }
  0x83   : > { %v264_v33 = vmul.f32 %v475_v8, %v260_v29  ;;  %v272_v34 = vmul.f32 %v476_v9, %v268_v30  ;;  %v280_v35 = vmul.f32 %v477_v10, %v276_v31  ;;  %v288_v36 = vmul.f32 %v478_v11, %v284_v32  ;;  %480 = vst [vmem:[%s923_s21 + $0x20] sm:$0xff] %v260_v29 }
  0x84   : > { %486 = vst [vmem:[%s923_s21 + $0x28] sm:$0xff] %v268_v30  ;;  %492 = vst [vmem:[%s923_s21 + $0x30] sm:$0xff] %v276_v31 }
  0x85   : > { %498 = vst [vmem:[%s923_s21 + $0x38] sm:$0xff] %v284_v32  ;;  %294 = vst [vmem:[%s923_s21] sm:$0xff] %v264_v33 }
  0x86   : > { %484 = vst [vmem:[%s923_s21 + $0x8] sm:$0xff] %v272_v34  ;;  %490 = vst [vmem:[%s923_s21 + $0x10] sm:$0xff] %v280_v35 }
  0x87   : > { %496 = vst [vmem:[%s923_s21 + $0x18] sm:$0xff] %v288_v36 }
  0x88   : > { %662 = shalt.err (!%p659_p9)
}
  0x89   : > { %s663_s20 = scalar_lea.hbm %s938_s3, 1536  ;;  %s667_s5 = scalar_lea.hbm %s995_s2, 3072 }
  0x8a   : > { %p664_p1 = scmp.ne.s32.totalorder %s938_s3, %s663_s20  ;;  %p668_p5 = scmp.lt.u32.totalorder %s938_s3, %s995_s2 }
  0x8b   : > { %p669_p13 = scmp.lt.u32.totalorder %s667_s5, %s663_s20  ;;  %p671_p8 = scmp.lt.u32.totalorder %s663_s20, %s938_s3 }
  0x8c   : > { %p665_p6 = pnand %p664_p1, %p1007_p0 }
  0x8d   : > { %p670_p3 = por %p669_p13, %p668_p5 }
  0x8e   : > { %p666_p2 = pneg %p665_p6 }
  0x8f   : > { %p672_p11 = por %p671_p8, %p670_p3 }
  0x91   : > { %p673_p4 = pnand %p672_p11, %p666_p2 }
  0x93   : > { %676 = shalt.err (!%p673_p4)
}
  0x94   : > { %s743_s26 = smov 128   ;;  %s744_s21 = smov 8  }
  0x95   : > { %511 = dma.vmem_to_hbm [thread:$0]  (%p1007_p0), %s940_s27, 1536, %s938_s3, %s340_s12, %s743_s26, %s743_s26, %s744_s21  }
  0x96 PF: > { %s368_s30 = sand.u32 1, %s715_s9   ;;  %p1008_p7 = scmp.ne.s32.totalorder %s1001_s24, 0 }
  0x97   : > { %p1009_p10 = scmp.ge.s32.totalorder %s735_s14, 2  ;;  %s369_s28 = scalar_lea.sflag [#allocation4], %s368_s30 }
  0x99   : > { %p521_p12 = pnand %p1009_p10, %p1008_p7 }
  0x9b   : > { %710 = dma.done.wait (!%p521_p12), %s369_s28, 1536  }
  0x9c   : > { %712 = vsyncadd (!%p521_p12), %s369_s28, 4294965760  ;;  %s21_s14 = sadd.s32 1, %s735_s14   ;;  %s1010_s9 = smov %s719_s10 }
  0x9d   : > { %p18_p9 = scmp.ge.s32.totalorder %s21_s14, 4   ;;  %s1011_s10 = smov %s723_s11 }
  0x9e   : > { %s1012_s11 = smov %s816_s23  ;;  %s1013_s12 = smov %s731_s13 }
  0x9f   : > { %s1014_s13 = smov %s1016_s17  ;;  %20 = sbr.rel (!%p18_p9) target bundleno = 8 (0x8), region = 104 }
  0xa6   :  { %374 = vsyncpa [#allocation3], 1 }
  0xa7   :  { %376 = vsyncpa [#allocation3 + $0x1], 1 }
  0xa8   :  { %377 = vsyncpa [#allocation6], 1 }
  0xa9   :  { %379 = vsyncpa [#allocation6 + $0x1], 1 }
  0xaa   :  { %380 = vsyncpa [#allocation4], 1 }
  0xab   :  { %382 = vsyncpa [#allocation4 + $0x1], 1 }

</bundles_post_ra>
